<compile_context>
chip_gen: v6e
topology: v6e:2x2x1
jax: 0.10.0
libtpu: 0.0.40
codegen_flags: <defaults>
</compile_context>

<pallas_src>
import functools

import jax
import jax.numpy as jnp
from jax.experimental import pallas as pl
from jax.experimental.pallas import tpu as pltpu


def _focal_loss_kernel(x_ref, t_ref, out_ref, *, gamma, alpha, num_classes,
                       psub, tiles_per_split, tile_rows, num_valid_rows):
    h = pl.program_id(1)
    r = pl.program_id(2)

    @pl.when(r == 0)
    def _():
        out_ref[...] = jnp.zeros_like(out_ref)

    t = t_ref[...]                                    # (tr, 128) int32, -1 == col pad

    # Row-validity mask: the last tile of each image / split half may be a
    # partial block (grid uses cdiv, no HBM row padding) and overshoot tiles
    # of the split are clamped onto the last real tile -> garbage rows.
    row_start = (h * tiles_per_split + r) * tile_rows
    row_idx = row_start + jax.lax.broadcasted_iota(jnp.int32, t.shape, 0)
    valid = jnp.logical_and(t >= 0, row_idx < num_valid_rows)

    if num_classes == 2:
        # Analytic binary log-softmax: logpt = -softplus(x_other - x_target).
        x0 = x_ref[0].astype(jnp.float32)             # (tr, 128)
        x1 = x_ref[1].astype(jnp.float32)
        is0 = t == 0
        x_t = jnp.where(is0, x0, x1)
        x_nt = jnp.where(is0, x1, x0)
        d = x_nt - x_t
        ed = jnp.exp(-jnp.abs(d))                     # EUP exp
        logpt = -(jnp.maximum(d, 0.0) + jnp.log(1.0 + ed))   # EUP log
        # pt / (1 - pt) algebraically from ed (one fewer exp; no clamp needed).
        inv = 1.0 / (1.0 + ed)                        # exact divide (accuracy)
        d_pos = d >= 0.0
        pt = inv * jnp.where(d_pos, ed, 1.0)
        one_minus_pt = inv * jnp.where(d_pos, 1.0, ed)
    else:
        # Streaming two-pass over classes: O(1) live vregs regardless of C;
        # pt is recovered from the exp(p - m) terms already needed for the LSE.
        m = x_ref[0].astype(jnp.float32)
        for c in range(1, num_classes):
            m = jnp.maximum(m, x_ref[c].astype(jnp.float32))
        s = jnp.zeros_like(m)
        x_sel = jnp.zeros_like(m)
        e_sel = jnp.zeros_like(m)
        for c in range(num_classes):
            p = x_ref[c].astype(jnp.float32)
            e = jnp.exp(p - m)
            s = s + e
            is_c = t == c
            x_sel = jnp.where(is_c, p, x_sel)
            e_sel = jnp.where(is_c, e, e_sel)
        logpt = x_sel - (m + jnp.log(s))
        pt = e_sel / s
        one_minus_pt = jnp.maximum(1.0 - pt, 0.0)     # guard fp rounding

    # alpha tensor is [alpha, 1 - alpha]; at = alpha[target] (binary quirk kept
    # for C > 2 as well, matching the original module's intent).
    at = jnp.where(t == 0, jnp.float32(alpha), jnp.float32(1.0 - alpha))
    # NOTE: pt above was intentionally computed from the UNSCALED logpt.
    logpt_scaled = logpt * at

    g = float(gamma)
    if g == float(int(g)) and 0 <= int(g) <= 4:
        focal = jnp.ones_like(one_minus_pt)
        for _ in range(int(g)):
            focal = focal * one_minus_pt
    else:
        focal = one_minus_pt ** jnp.float32(g)

    loss = -focal * logpt_scaled                      # (tr, 128)
    loss = jnp.where(valid, loss, 0.0)                # mask pad cols + garbage rows

    tr = loss.shape[0]
    partial = loss.reshape(tr // psub, psub, 128).sum(axis=0)   # vreg adds
    out_ref[...] = out_ref[...] + partial


def _vmem_budget_bytes():
    # ~4 MiB per logits tile keeps the double-buffered footprint (~2x both
    # inputs) inside the default scoped VMEM on v5e (16 MiB) and v7x (32 MiB
    # scoped of 64 MiB/TC), while tiles stay large enough (hundreds-thousands
    # of rows) to sit on the HBM roofline.  Generation-aware cap as a guard.
    budget = 4 << 20
    try:
        cap = pltpu.get_tpu_info().vmem_capacity_bytes
        budget = min(budget, cap // 8)
    except Exception:
        pass
    return budget


def _choose_tiling(num_rows, row_bytes, budget_bytes, max_tile_rows=None):
    """Rows-per-tile: a multiple of 8 under the VMEM budget, or all rows."""
    cap = max(8, (budget_bytes // row_bytes) // 8 * 8)
    if max_tile_rows is not None:
        cap = max(8, min(cap, (max_tile_rows // 8) * 8))
    if num_rows <= cap:
        return num_rows
    return cap


def focal_loss(logits_nchw, target_nhw, *, gamma=2.0, alpha=0.25,
               size_average=True, _max_tile_rows=None):
    """Pallas TPU focal loss. logits: (N, C, H, W); target: (N, H, W) int."""
    N, C, H, W = logits_nchw.shape
    HW = H * W
    M = N * HW

    x = logits_nchw.reshape(N, C, HW)                 # free reshape (contiguous)
    t = target_nhw.reshape(N, HW).astype(jnp.int32)

    R = pl.cdiv(HW, 128)
    HW_pad = R * 128
    if HW_pad != HW:
        # TODO(synk): for ragged H*W in a hot path, replace this column pad
        # (one extra HBM pass over the logits) with a manual-DMA path that
        # streams flat chunks from the unpadded (N, C, HW) array.
        x = jnp.pad(x, ((0, 0), (0, 0), (0, HW_pad - HW)))
        t = jnp.pad(t, ((0, 0), (0, HW_pad - HW)), constant_values=-1)

    x = x.reshape(N, C, R, 128)
    t = t.reshape(N, R, 128)

    itemsize = jnp.dtype(x.dtype).itemsize
    row_bytes = 128 * (C * itemsize + 4)
    tr = _choose_tiling(R, row_bytes, _vmem_budget_bytes(), _max_tile_rows)
    n_tiles = pl.cdiv(R, tr)                          # no row padding in HBM

    # Split the spatial tile axis into 2 parallel halves so both TensorCores
    # are used on v7x even for N == 1 / odd N.  Overshoot tiles are clamped to
    # the last real tile by the index_map and fully row-masked in-kernel.
    n_split = 2 if n_tiles >= 2 else 1
    n_half = pl.cdiv(n_tiles, n_split)

    psub = 8 if tr % 8 == 0 else tr
    grid = (N, n_split, n_half)

    kernel = functools.partial(
        _focal_loss_kernel,
        gamma=float(gamma), alpha=float(alpha), num_classes=C, psub=psub,
        tiles_per_split=n_half, tile_rows=tr, num_valid_rows=R)

    def x_map(n, h, r):
        return (n, 0, jnp.minimum(h * n_half + r, n_tiles - 1), 0)

    def t_map(n, h, r):
        return (n, jnp.minimum(h * n_half + r, n_tiles - 1), 0)

    bytes_accessed = int(N * R * 128 * (C * itemsize + 4)
                         + N * n_split * psub * 128 * 4)
    cost = pl.CostEstimate(flops=15 * M, transcendentals=3 * M,
                           bytes_accessed=bytes_accessed)

    partial = pl.pallas_call(
        kernel,
        out_shape=jax.ShapeDtypeStruct((N, n_split, psub, 128), jnp.float32),
        grid_spec=pltpu.PrefetchScalarGridSpec(
            num_scalar_prefetch=0,
            grid=grid,
            in_specs=[
                pl.BlockSpec((None, C, tr, 128), x_map),
                pl.BlockSpec((None, tr, 128), t_map),
            ],
            out_specs=pl.BlockSpec((None, None, psub, 128),
                                   lambda n, h, r: (n, h, 0, 0)),
        ),
        compiler_params=pltpu.CompilerParams(
            dimension_semantics=("parallel", "parallel", "arbitrary")),
        cost_estimate=cost,
    )(x, t)

    total = jnp.sum(partial)                          # tiny final reduce
    if size_average:
        return total / jnp.float32(M)
    return total


def _focal_loss_ref(logits_nchw, target_nhw, gamma=2.0, alpha=0.25,
                    size_average=True):
    N, C, H, W = logits_nchw.shape
    x = logits_nchw.reshape(N, C, -1).transpose(0, 2, 1).reshape(-1, C)
    t = target_nhw.reshape(-1).astype(jnp.int32)
    logp = jax.nn.log_softmax(x.astype(jnp.float32), axis=1)
    logpt = jnp.take_along_axis(logp, t[:, None], axis=1)[:, 0]
    pt = jnp.exp(logpt)
    at = jnp.where(t == 0, alpha, 1.0 - alpha)
    loss = -((1.0 - pt) ** gamma) * (logpt * at)
    return loss.mean() if size_average else loss.sum()


if __name__ == "__main__":
    key = jax.random.PRNGKey(0)
    ks = jax.random.split(key, 8)

    # Case 1: binary lane-segmentation shapes, HW multiple of 128 (no padding).
    logits = jax.random.normal(ks[0], (2, 2, 16, 16), dtype=jnp.float32)
    target = jax.random.randint(ks[1], (2, 16, 16), 0, 2, dtype=jnp.int32)
    out = jax.block_until_ready(
        focal_loss(logits, target, gamma=2.0, alpha=0.25, size_average=True))
    ref = _focal_loss_ref(logits, target, 2.0, 0.25, True)
    assert jnp.allclose(out, ref, atol=1e-5, rtol=1e-5), (out, ref)

    # Case 2: ragged spatial size (column pad + -1 masking), sum mode, gamma=3.
    logits2 = jax.random.normal(ks[2], (2, 2, 10, 13), dtype=jnp.float32)
    target2 = jax.random.randint(ks[3], (2, 10, 13), 0, 2, dtype=jnp.int32)
    out2 = jax.block_until_ready(
        focal_loss(logits2, target2, gamma=3.0, alpha=0.4, size_average=False))
    ref2 = _focal_loss_ref(logits2, target2, 3.0, 0.4, False)
    assert jnp.allclose(out2, ref2, atol=1e-4, rtol=1e-5), (out2, ref2)

    # Case 3: C=3 streaming path with forced small tiles: exercises the cdiv
    # grid (partial last tile, garbage-row masking), the 2-way parallel
    # spatial split (with a clamped overshoot tile) and accumulation over r.
    logits3 = jax.random.normal(ks[4], (1, 3, 40, 64), dtype=jnp.float32)
    target3 = jax.random.randint(ks[5], (1, 40, 64), 0, 3, dtype=jnp.int32)
    out3 = jax.block_until_ready(
        focal_loss(logits3, target3, gamma=2.0, alpha=0.25, size_average=True,
                   _max_tile_rows=8))
    ref3 = _focal_loss_ref(logits3, target3, 2.0, 0.25, True)
    assert jnp.allclose(out3, ref3, atol=1e-5, rtol=1e-5), (out3, ref3)

    # Case 4: bf16 logits straight from the producer (upcast happens in VMEM).
    logits4 = jax.random.normal(ks[6], (2, 2, 16, 16), dtype=jnp.bfloat16)
    target4 = jax.random.randint(ks[7], (2, 16, 16), 0, 2, dtype=jnp.int32)
    out4 = jax.block_until_ready(
        focal_loss(logits4, target4, gamma=2.0, alpha=0.25, size_average=True))
    ref4 = _focal_loss_ref(logits4, target4, 2.0, 0.25, True)
    assert jnp.allclose(out4, ref4, atol=2e-5, rtol=1e-5), (out4, ref4)

    print("KERNEL_OK")
</pallas_src>

<mosaic_0001>
module attributes {stable_mosaic.version = 11 : i64} {
  func.func @_focal_loss_kernel(%arg0: i32, %arg1: i32, %arg2: i32, %arg3: memref<1x2x2x128xf32, #tpu.memory_space<vmem>>, %arg4: memref<1x2x128xi32, #tpu.memory_space<vmem>>, %arg5: memref<1x1x2x128xf32, #tpu.memory_space<vmem>>) attributes {dimension_semantics = [#tpu.dimension_semantics<parallel>, #tpu.dimension_semantics<parallel>, #tpu.dimension_semantics<arbitrary>], iteration_bounds = array<i64: 2, 1, 1>, scalar_prefetch = 0 : i64, scratch_operands = 0 : i64, tpu.core_type = #tpu.core_type<tc>, window_params = [{transform_indices = @transform_0, window_bounds = array<i64: 1, 2, 2, 128>}, {transform_indices = @transform_1, window_bounds = array<i64: 1, 2, 128>}, {transform_indices = @transform_2, window_bounds = array<i64: 1, 1, 2, 128>}]} {
    %c0_i32 = arith.constant 0 : i32
    %0 = arith.cmpi eq, %arg2, %c0_i32 : i32
    %1 = arith.extui %0 : i1 to i32
    %c0_i32_0 = arith.constant 0 : i32
    %2 = arith.cmpi ne, %1, %c0_i32_0 : i32
    scf.if %2 {
      %cst_35 = arith.constant 0.000000e+00 : f32
      %68 = vector.broadcast %cst_35 : f32 to vector<2x128xf32>
      %c0_36 = arith.constant 0 : index
      %c0_37 = arith.constant 0 : index
      %c0_38 = arith.constant 0 : index
      %c0_39 = arith.constant 0 : index
      %69 = vector.load %arg5[%c0_36, %c0_37, %c0_38, %c0_39] : memref<1x1x2x128xf32, #tpu.memory_space<vmem>>, vector<1x1x2x128xf32>
      %70 = vector.shape_cast %69 : vector<1x1x2x128xf32> to vector<2x128xf32>
      %71 = vector.shape_cast %68 : vector<2x128xf32> to vector<1x1x2x128xf32>
      tpu.vector_store %arg5[%c0_36, %c0_37, %c0_38, %c0_39], %71 {strides = array<i32>} : memref<1x1x2x128xf32, #tpu.memory_space<vmem>>, vector<1x1x2x128xf32>,
    } else {
    }
    %c0 = arith.constant 0 : index
    %c0_1 = arith.constant 0 : index
    %c0_2 = arith.constant 0 : index
    %3 = vector.load %arg4[%c0, %c0_1, %c0_2] : memref<1x2x128xi32, #tpu.memory_space<vmem>>, vector<1x2x128xi32>
    %4 = vector.shape_cast %3 : vector<1x2x128xi32> to vector<2x128xi32>
    %c1_i32 = arith.constant 1 : i32
    %5 = arith.muli %arg1, %c1_i32 : i32
    %6 = arith.addi %5, %arg2 : i32
    %c2_i32 = arith.constant 2 : i32
    %7 = arith.muli %6, %c2_i32 : i32
    %8 = tpu.iota {dimensions = array<i32: 0>} : vector<2x128xi32>
    %9 = vector.broadcast %7 : i32 to vector<2x128xi32>
    %10 = arith.addi %9, %8 : vector<2x128xi32>
    %c0_i32_3 = arith.constant 0 : i32
    %11 = vector.broadcast %c0_i32_3 : i32 to vector<2x128xi32>
    %12 = arith.cmpi sge, %4, %11 : vector<2x128xi32>
    %c2_i32_4 = arith.constant 2 : i32
    %13 = vector.broadcast %c2_i32_4 : i32 to vector<2x128xi32>
    %14 = arith.cmpi slt, %10, %13 : vector<2x128xi32>
    %15 = arith.andi %12, %14 : vector<2x128xi1>
    %c0_5 = arith.constant 0 : index
    %c0_6 = arith.constant 0 : index
    %c0_7 = arith.constant 0 : index
    %c0_8 = arith.constant 0 : index
    %16 = vector.load %arg3[%c0_5, %c0_6, %c0_7, %c0_8] : memref<1x2x2x128xf32, #tpu.memory_space<vmem>>, vector<1x1x2x128xf32>
    %17 = vector.shape_cast %16 : vector<1x1x2x128xf32> to vector<2x128xf32>
    %c0_9 = arith.constant 0 : index
    %c1 = arith.constant 1 : index
    %c0_10 = arith.constant 0 : index
    %c0_11 = arith.constant 0 : index
    %18 = vector.load %arg3[%c0_9, %c1, %c0_10, %c0_11] : memref<1x2x2x128xf32, #tpu.memory_space<vmem>>, vector<1x1x2x128xf32>
    %19 = vector.shape_cast %18 : vector<1x1x2x128xf32> to vector<2x128xf32>
    %c0_i32_12 = arith.constant 0 : i32
    %20 = vector.broadcast %c0_i32_12 : i32 to vector<2x128xi32>
    %21 = arith.cmpi eq, %4, %20 : vector<2x128xi32>
    %22 = arith.select %21, %17, %19 : vector<2x128xi1>, vector<2x128xf32>
    %23 = arith.select %21, %19, %17 : vector<2x128xi1>, vector<2x128xf32>
    %24 = arith.subf %23, %22 : vector<2x128xf32>
    %25 = math.absf %24 : vector<2x128xf32>
    %cst = arith.constant 0.000000e+00 : f32
    %26 = vector.broadcast %cst : f32 to vector<2x128xf32>
    %27 = arith.subf %26, %25 : vector<2x128xf32>
    %28 = math.exp %27 : vector<2x128xf32>
    %cst_13 = arith.constant 0.000000e+00 : f32
    %29 = vector.broadcast %cst_13 : f32 to vector<2x128xf32>
    %30 = arith.maximumf %24, %29 : vector<2x128xf32>
    %cst_14 = arith.constant 1.000000e+00 : f32
    %31 = vector.broadcast %cst_14 : f32 to vector<2x128xf32>
    %32 = arith.addf %31, %28 : vector<2x128xf32>
    %33 = math.log %32 : vector<2x128xf32>
    %34 = arith.addf %30, %33 : vector<2x128xf32>
    %cst_15 = arith.constant 0.000000e+00 : f32
    %35 = vector.broadcast %cst_15 : f32 to vector<2x128xf32>
    %36 = arith.subf %35, %34 : vector<2x128xf32>
    %cst_16 = arith.constant 1.000000e+00 : f32
    %37 = vector.broadcast %cst_16 : f32 to vector<2x128xf32>
    %38 = arith.addf %37, %28 : vector<2x128xf32>
    %cst_17 = arith.constant 1.000000e+00 : f32
    %39 = vector.broadcast %cst_17 : f32 to vector<2x128xf32>
    %40 = arith.divf %39, %38 : vector<2x128xf32>
    %cst_18 = arith.constant 0.000000e+00 : f32
    %41 = vector.broadcast %cst_18 : f32 to vector<2x128xf32>
    %42 = arith.cmpf oge, %24, %41 : vector<2x128xf32>
    %cst_19 = arith.constant 1.000000e+00 : f32
    %43 = vector.broadcast %cst_19 : f32 to vector<2x128xf32>
    %44 = arith.select %42, %43, %28 : vector<2x128xi1>, vector<2x128xf32>
    %45 = arith.mulf %40, %44 : vector<2x128xf32>
    %c0_i32_20 = arith.constant 0 : i32
    %46 = vector.broadcast %c0_i32_20 : i32 to vector<2x128xi32>
    %47 = arith.cmpi eq, %4, %46 : vector<2x128xi32>
    %cst_21 = arith.constant 2.500000e-01 : f32
    %cst_22 = arith.constant 7.500000e-01 : f32
    %48 = vector.broadcast %cst_21 : f32 to vector<2x128xf32>
    %49 = vector.broadcast %cst_22 : f32 to vector<2x128xf32>
    %50 = arith.select %47, %48, %49 : vector<2x128xi1>, vector<2x128xf32>
    %51 = arith.mulf %36, %50 : vector<2x128xf32>
    %cst_23 = arith.constant 1.000000e+00 : f32
    %52 = vector.broadcast %cst_23 : f32 to vector<2x128xf32>
    %53 = arith.mulf %52, %45 : vector<2x128xf32>
    %54 = arith.mulf %53, %45 : vector<2x128xf32>
    %cst_24 = arith.constant 0.000000e+00 : f32
    %55 = vector.broadcast %cst_24 : f32 to vector<2x128xf32>
    %56 = arith.subf %55, %54 : vector<2x128xf32>
    %57 = arith.mulf %56, %51 : vector<2x128xf32>
    %cst_25 = arith.constant 0.000000e+00 : f32
    %58 = vector.broadcast %cst_25 : f32 to vector<2x128xf32>
    %59 = arith.select %15, %57, %58 : vector<2x128xi1>, vector<2x128xf32>
    %60 = vector.shape_cast %59 : vector<2x128xf32> to vector<1x2x128xf32>
    %cst_26 = arith.constant dense<0.000000e+00> : vector<2x128xf32>
    %61 = vector.multi_reduction <add>, %60, %cst_26 [0] : vector<1x2x128xf32> to vector<2x128xf32>
    %c0_27 = arith.constant 0 : index
    %c0_28 = arith.constant 0 : index
    %c0_29 = arith.constant 0 : index
    %c0_30 = arith.constant 0 : index
    %62 = vector.load %arg5[%c0_27, %c0_28, %c0_29, %c0_30] : memref<1x1x2x128xf32, #tpu.memory_space<vmem>>, vector<1x1x2x128xf32>
    %63 = vector.shape_cast %62 : vector<1x1x2x128xf32> to vector<2x128xf32>
    %64 = arith.addf %63, %61 : vector<2x128xf32>
    %c0_31 = arith.constant 0 : index
    %c0_32 = arith.constant 0 : index
    %c0_33 = arith.constant 0 : index
    %c0_34 = arith.constant 0 : index
    %65 = vector.load %arg5[%c0_31, %c0_32, %c0_33, %c0_34] : memref<1x1x2x128xf32, #tpu.memory_space<vmem>>, vector<1x1x2x128xf32>
    %66 = vector.shape_cast %65 : vector<1x1x2x128xf32> to vector<2x128xf32>
    %67 = vector.shape_cast %64 : vector<2x128xf32> to vector<1x1x2x128xf32>
    tpu.vector_store %arg5[%c0_31, %c0_32, %c0_33, %c0_34], %67 {strides = array<i32>} : memref<1x1x2x128xf32, #tpu.memory_space<vmem>>, vector<1x1x2x128xf32>,
    return
  }
  func.func @transform_0(%arg0: i32, %arg1: i32, %arg2: i32) -> (i32, i32, i32, i32) {
    %c1_i32 = arith.constant 1 : i32
    %0 = arith.muli %arg1, %c1_i32 : i32
    %1 = arith.addi %0, %arg2 : i32
    %c0_i32 = arith.constant 0 : i32
    %2 = arith.minsi %1, %c0_i32 : i32
    %c0_i32_0 = arith.constant 0 : i32
    %c0_i32_1 = arith.constant 0 : i32
    %c0_i32_2 = arith.constant 0 : i32
    return %arg0, %c0_i32_0, %2, %c0_i32_1 : i32, i32, i32, i32
  }
  func.func @transform_1(%arg0: i32, %arg1: i32, %arg2: i32) -> (i32, i32, i32) {
    %c1_i32 = arith.constant 1 : i32
    %0 = arith.muli %arg1, %c1_i32 : i32
    %1 = arith.addi %0, %arg2 : i32
    %c0_i32 = arith.constant 0 : i32
    %2 = arith.minsi %1, %c0_i32 : i32
    %c0_i32_0 = arith.constant 0 : i32
    %c0_i32_1 = arith.constant 0 : i32
    return %arg0, %2, %c0_i32_0 : i32, i32, i32
  }
  func.func @transform_2(%arg0: i32, %arg1: i32, %arg2: i32) -> (i32, i32, i32, i32) {
    %c0_i32 = arith.constant 0 : i32
    %c0_i32_0 = arith.constant 0 : i32
    %c0_i32_1 = arith.constant 0 : i32
    return %arg0, %arg1, %c0_i32, %c0_i32_0 : i32, i32, i32, i32
  }
}

</mosaic_0001>

<bundles_post_ra>
// kernel: tpu_custom_call.1
= control target key start
LH: loop header
LB: loop body
LE: loop exit
PB: predicated region body
PF: predicated region fallthrough
CT: control target
= control target key end

     0   :  { %7 = vsyncpa [#allocation3], 0  ;;  %s851_s0 = inlined_call_operand.hbm [shape: f32[2,2,2,128], index: 0, kind: input, shape index: {}]   ;;  %s852_s1 = inlined_call_operand.hbm [shape: s32[2,2,128], index: 1, kind: input, shape index: {}]   ;;  %s853_s2 = inlined_call_operand.hbm [shape: f32[2,1,2,128], index: 2, kind: output, shape index: {}]  }
   0x1   :  { %9 = vsyncpa [#allocation3 + $0x1], 0 }
   0x2   :  { %10 = vsyncpa [#allocation6], 0 }
   0x3   :  { %12 = vsyncpa [#allocation6 + $0x1], 0 }
   0x4   :  { %13 = vsyncpa [#allocation4], 0 }
   0x5   :  { %15 = vsyncpa [#allocation4 + $0x1], 0  ;;  %s680_s9 = smov 0   ;;  %s682_s10 = smov 0  }
   0x6   :  { %s684_s11 = smov 0   ;;  %s686_s12 = smov 0  }
   0x7   :  { %s688_s13 = smov 0   ;;  %s690_s14 = smov 0  }
   0x8 LB: > { %s420_s15 = sadd.s32 4294967295, %s656_s14   ;;  %s421_s16 = sadd.s32 4294967294, %s656_s14   ;;  %s656_s14 = sphi %s690_s14, %s21_s14   ;;  %s652_s13 = sphi %s688_s13, %s865_s13   ;;  %s648_s12 = sphi %s686_s12, %s864_s12   ;;  %s644_s11 = sphi %s684_s11, %s863_s11   ;;  %s640_s10 = sphi %s682_s10, %s862_s10   ;;  %s636_s9 = sphi %s680_s9, %s861_s9  }
   0x9   : > { %s40_s17 = sadd.s32 1, %s652_s13  ;;  %s55_s18 = sadd.s32 1, %s644_s11 }
   0xa   : > { %p42_p0 = scmp.ge.s32.totalorder %s40_s17, 2  ;;  %p62_p1 = scmp.ne.s32.totalorder %s644_s11, %s640_s10 }
   0xb   : > { %p63_p2 = scmp.eq.s32.totalorder %s656_s14, 0  ;;  %p68_p3 = scmp.ne.s32.totalorder %s640_s10, %s636_s9 }
   0xc   : > { %s867_s17 = smov (%p42_p0, %s40_s17), 0  ;;  %p69_p5 = scmp.eq.s32.totalorder %s420_s15, 0 }
   0xd   : > { %p721_p4 = por %p63_p2, %p62_p1  ;;  %s50_s20 = ssub.s32 %s652_s13, %s867_s17 }
   0xe   : > { %p128_p6 = scmp.eq.s32.totalorder %s420_s15, 1  ;;  %p53_p7 = scmp.eq.s32.totalorder %s50_s20, 0 }
   0xf   : > { %p727_p8 = por %p69_p5, %p68_p3  ;;  %p134_p10 = scmp.eq.s32.totalorder %s421_s16, 1 }
  0x10   : > { %p731_p9 = por %p128_p6, %p62_p1  ;;  %p456_p13 = scmp.lt.s32.totalorder %s656_s14, 2 }
  0x11   : > { %s736_s23 = scalar_select %p53_p7, %s644_s11, %s55_s18  }
  0x12   : > { %p738_p11 = por %p134_p10, %p68_p3  ;;  %s745_s25 = sand.u32 1, %s644_s11  }
  0x13   : > { %s424_s26 = sshll.u32 %s745_s25, 2  ;;  %s438_s27 = sshll.u32 %s652_s13, 6 }
  0x14   : > { %s168_s30 = scalar_lea.hbm %s851_s0, %s438_s27  ;;  %s158_s3 = scalar_lea.vmem [#allocation2], %s424_s26 }
  0x15   : > { %s169_s4 = sshll.u32 %s158_s3, 4  ;;  %p754_p0 = pnand %p456_p13, %p721_p4  ;;  %s170_s4 = int_to_ptr.vmem [resolvable:$true] %s169_s4 }
  0x16   : > { %p429_p1 = scmp.ge.s32.totalorder %s656_s14, 1  ;;  %s155_s6 = scalar_lea.sflag [#allocation3], %s745_s25 }
  0x17   : > { %p518_p2 = pneg %p754_p0  ;;  %s529_s7 = scalar_lea.vmem %s170_s4, 64 }
  0x18   : > { %p530_p3 = scmp.ne.s32.totalorder %s170_s4, %s529_s7  ;;  %s658_s8 = smov [#allocation2]  }
  0x19   : > { %s534_s15 = sshll.u32 %s658_s8, 4  ;;  %s535_s15 = int_to_ptr.vmem [resolvable:$false] %s534_s15 }
  0x1a   : > { %p532_p5 = pnand %p530_p3, %p518_p2  ;;  %s536_s16 = scalar_lea.vmem %s535_s15, 128 }
  0x1b   : > { %p537_p4 = scmp.lt.s32.totalorder %s170_s4, %s535_s15  ;;  %p538_p7 = scmp.lt.s32.totalorder %s536_s16, %s529_s7 }
  0x1c   : > { %p533_p6 = pneg %p532_p5 }
  0x1d   : > { %p539_p10 = por %p538_p7, %p537_p4 }
  0x1f   : > { %p540_p13 = pnand %p539_p10, %p533_p6 }
  0x21   : > { %543 = shalt.err (!%p540_p13)
}
  0x22   : > { %s659_s18 = smov 32   ;;  %s660_s19 = smov 2  }
  0x23   : > { %448 = dma.hbm_to_vmem [thread:$0]  (!%p754_p0), %s168_s30, 64, %s170_s4, %s155_s6, %s659_s18, %s659_s18, %s660_s19  }
  0x24   : > { %p199_p3 = scmp.lt.s32.totalorder %s656_s14, 3  ;;  %s427_s20 = sshll.u32 %s745_s25, 1 }
  0x25   : > { %s428_s26 = sshll.u32 %s652_s13, 5  ;;  %s183_s7 = scalar_lea.vmem [#allocation5], %s427_s20 }
  0x26   : > { %p772_p5 = pnand %p429_p1, %p199_p3  ;;  %s192_s3 = scalar_lea.hbm %s852_s1, %s428_s26 }
  0x27   : > { %s194_s8 = sshll.u32 %s183_s7, 4  ;;  %s180_s15 = scalar_lea.sflag [#allocation6], %s745_s25  ;;  %s195_s8 = int_to_ptr.vmem [resolvable:$true] %s194_s8 }
  0x28   : > { %s557_s16 = scalar_lea.vmem %s195_s8, 32  ;;  %s661_s30 = smov [#allocation5]  }
  0x29   : > { %p558_p6 = scmp.ne.s32.totalorder %s195_s8, %s557_s16  ;;  %s562_s4 = sshll.u32 %s661_s30, 4  ;;  %s563_s4 = int_to_ptr.vmem [resolvable:$false] %s562_s4 }
  0x2a   : > { %s564_s6 = scalar_lea.vmem %s563_s4, 64  ;;  %p565_p1 = scmp.lt.s32.totalorder %s195_s8, %s563_s4 }
  0x2b   : > { %p560_p4 = pnand %p558_p6, %p518_p2  ;;  %p566_p10 = scmp.lt.s32.totalorder %s564_s6, %s557_s16 }
  0x2d   : > { %p561_p7 = pneg %p560_p4  ;;  %p567_p13 = por %p566_p10, %p565_p1 }
  0x2f   : > { %p568_p3 = pnand %p567_p13, %p561_p7 }
  0x31   : > { %571 = shalt.err (!%p568_p3)
}
  0x32   : > { %451 = dma.hbm_to_vmem [thread:$0]  (!%p754_p0), %s192_s3, 32, %s195_s8, %s180_s15  }
  0x33   : > { %203 = sbr.rel (%p772_p5) target bundleno = 127 (0x7f), region = 28  ;;  %s788_s25 = sand.u32 (!%p772_p5), 1, %s640_s10  }
  0x34   : > { %s430_s18 = sshll.u32 (!%p772_p5), %s788_s25, 2  ;;  %s206_s19 = scalar_lea.sflag (!%p772_p5), [#allocation3], %s788_s25 }
  0x35   : > { %s209_s20 = scalar_lea.vmem (!%p772_p5), [#allocation2], %s430_s18 }
  0x38   : > { %623 = dma.done.wait (%p727_p8), %s206_s19, 64  }
  0x39   : > { %625 = vsyncadd (%p727_p8), %s206_s19, 4294967232  ;;  %s431_s5 = sshll.u32 %s788_s25, 1  ;;  %s215_s26 = scalar_lea.sflag [#allocation6], %s788_s25 }
  0x3a   : > { %s218_s27 = scalar_lea.vmem [#allocation5], %s431_s5 }
  0x3b   : > { %627 = dma.done.wait (%p727_p8), %s215_s26, 32  }
  0x3c   : > { %629 = vsyncadd (%p727_p8), %s215_s26, 4294967264  ;;  %s802_s28 = scalar_lea.vmem [#allocation7], %s431_s5  ;;  %v662_v0 = vmov 0.0   ;;  %v255_v1 = vld [vmem:[%s218_s27] sm:$0x3]  ;;  %v258_v12 = vlaneseq  ;;  %v663_v21 = vmov 0.75  }
  0x3d   : > { %254 = vst [vmem:[%s802_s28] sm:$0x3] %v662_v0  ;;  %v265_v2 = vld [vmem:[%s209_s20] sm:$0x3]  ;;  %v433_v3 = vld [vmem:[%s209_s20 + $0x2] sm:$0x3]  ;;  %vm268_vm0 = vcmp.eq.s32.totalorder %v255_v1, 0 }
  0x3e   : > { %v269_v4 = vsel %vm268_vm0, %v265_v2, %v433_v3  ;;  %v270_v5 = vsel %vm268_vm0, %v433_v3, %v265_v2  ;;  %v259_v17 = vshrl.u32 %v258_v12, 7  ;;  %v287_v22 = vsel %vm268_vm0, 0.25, %v663_v21  ;;  %s435_s21 = sshll.u32 %s648_s12, 5  ;;  %s312_s29 = sshll.u32 %s802_s28, 4  ;;  %s313_s29 = int_to_ptr.vmem [resolvable:$true] %s312_s29 }
  0x3f   : > { %v271_v6 = vsub.f32 %v270_v5, %v269_v4  ;;  %vm262_vm2 = vcmp.ge.s32.totalorder %v255_v1, 0  ;;  %s310_s8 = scalar_lea.hbm %s853_s2, %s435_s21  ;;  %s298_s15 = scalar_lea.sflag [#allocation4], %s788_s25 }
  0x40   : > { %vm263_vm3 = vcmp.lt.s32.totalorder %v259_v17, 2  ;;  %s572_s16 = scalar_lea.vmem %s313_s29, 32  ;;  %s664_s30 = smov [#allocation7]  }
  0x41   : > { %v272_v7 = vand.u32 2147483647, %v271_v6  ;;  %vm284_vm1 = vcmp.ge.f32.partialorder %v271_v6, 0.0  ;;  %v276_v13 = vmax.f32 %v271_v6, 0.0  ;;  %vm264_vm4 = vmand %vm262_vm2, %vm263_vm3  ;;  %p573_p8 = scmp.ne.s32.totalorder %s313_s29, %s572_s16  ;;  %s576_s4 = sshll.u32 %s664_s30, 4  ;;  %s577_s4 = int_to_ptr.vmem [resolvable:$false] %s576_s4 }
  0x42   : > { %s578_s6 = scalar_lea.vmem %s577_s4, 64  ;;  %p579_p5 = scmp.lt.s32.totalorder %s313_s29, %s577_s4 }
  0x43   : > { %v273_v8 = vsub.f32 0.0, %v272_v7  ;;  %p574_p0 = pnand %p573_p8, %p731_p9  ;;  %p580_p6 = scmp.lt.s32.totalorder %s578_s6, %s572_s16 }
  0x44   : > { %v294_v28 = vld [vmem:[%s802_s28] sm:$0x3] }
  0x45   : > { %v274_v9 = vmul.f32 1.442695, %v273_v8  ;;  %p575_p2 = pneg %p574_p0  ;;  %p581_p4 = por %p580_p6, %p579_p5 }
  0x47   : > { %510 = vpow2.f32 %v274_v9  ;;  %p582_p7 = pnand %p581_p4, %p575_p2 }
  0x54   : > { %v511_v10 = vpop.eup %510 }
  0x55   : > { %v277_v11 = vadd.f32 1.0, %v511_v10  ;;  %v285_v14 = vsel %vm284_vm1, 1.0, %v511_v10 }
  0x57   : > { %512 = vlog2.f32 %v277_v11 }
  0x58   : > { %514 = vrcp.f32 %v277_v11 }
  0x64   : > { %v513_v15 = vpop.eup %512 }
  0x65   : > { %v515_v16 = vpop.eup %514  ;;  %v279_v18 = vmul.f32 0.6931472, %v513_v15 }
  0x66   : > { %v286_v19 = vmul.f32 %v515_v16, %v285_v14 }
  0x67   : > { %v280_v20 = vadd.f32 %v279_v18, %v276_v13 }
  0x68   : > { %v289_v23 = vmul.f32 %v286_v19, %v286_v19 }
  0x69   : > { %v281_v24 = vsub.f32 0.0, %v280_v20 }
  0x6a   : > { %v290_v25 = vsub.f32 0.0, %v289_v23 }
  0x6b   : > { %v288_v26 = vmul.f32 %v287_v22, %v281_v24 }
  0x6d   : > { %v291_v27 = vmul.f32 %v290_v25, %v288_v26 }
  0x6f   : > { %v292_v29 = vsel %vm264_vm4, %v291_v27, 0.0 }
  0x70   : > { %v295_v30 = vadd.f32 %v294_v28, %v292_v29 }
  0x72   : > { %296 = vst [vmem:[%s802_s28] sm:$0x3] %v295_v30 }
  0x73   : > { %585 = shalt.err (!%p582_p7)
}
  0x74   : > { %s586_s12 = scalar_lea.hbm %s310_s8, 32  ;;  %s590_s19 = scalar_lea.hbm %s853_s2, 64 }
  0x75   : > { %p587_p1 = scmp.ne.s32.totalorder %s310_s8, %s586_s12  ;;  %p591_p3 = scmp.lt.s32.totalorder %s310_s8, %s853_s2 }
  0x76   : > { %p592_p8 = scmp.lt.s32.totalorder %s590_s19, %s586_s12 }
  0x77   : > { %p588_p10 = pnand %p587_p1, %p731_p9 }
  0x78   : > { %p593_p0 = por %p592_p8, %p591_p3 }
  0x79   : > { %p589_p13 = pneg %p588_p10 }
  0x7b   : > { %p594_p12 = pnand %p593_p0, %p589_p13 }
  0x7d   : > { %597 = shalt.err (!%p594_p12)
}
  0x7e   : > { %443 = dma.vmem_to_hbm [thread:$0]  (%p731_p9), %s313_s29, 32, %s310_s8, %s298_s15  }
  0x7f PF: > { %s324_s26 = sand.u32 1, %s636_s9   ;;  %p860_p2 = scmp.ge.s32.totalorder %s656_s14, 2 }
  0x80   : > { %s325_s27 = scalar_lea.sflag [#allocation4], %s324_s26 }
  0x81   : > { %p453_p5 = pnand %p860_p2, %p738_p11 }
  0x83   : > { %p454_p6 = pneg %p453_p5 }
  0x85   : > { %631 = dma.done.wait (%p454_p6), %s325_s27, 32  }
  0x86   : > { %633 = vsyncadd (%p454_p6), %s325_s27, 4294967264  ;;  %s21_s14 = sadd.s32 1, %s656_s14   ;;  %s861_s9 = smov %s640_s10 }
  0x87   : > { %p18_p4 = scmp.ge.s32.totalorder %s21_s14, 4   ;;  %s862_s10 = smov %s644_s11 }
  0x88   : > { %s863_s11 = smov %s736_s23  ;;  %s864_s12 = smov %s652_s13 }
  0x89   : > { %s865_s13 = smov %s867_s17  ;;  %20 = sbr.rel (!%p18_p4) target bundleno = 8 (0x8), region = 91 }
  0x8e   :  { %330 = vsyncpa [#allocation3], 1 }
  0x8f   :  { %332 = vsyncpa [#allocation3 + $0x1], 1 }
  0x90   :  { %333 = vsyncpa [#allocation6], 1 }
  0x91   :  { %335 = vsyncpa [#allocation6 + $0x1], 1 }
  0x92   :  { %336 = vsyncpa [#allocation4], 1 }
  0x93   :  { %338 = vsyncpa [#allocation4 + $0x1], 1 }

</bundles_post_ra>
